<compile_context>
chip_gen: v6e
topology: v6e:2x2x1
jax: 0.10.0
libtpu: 0.0.40
codegen_flags: <defaults>
</compile_context>

<pallas_src>
import functools

import jax
import jax.numpy as jnp
from jax import lax
from jax.experimental import pallas as pl
from jax.experimental.pallas import tpu as pltpu


_MIN_VMEM = 16 * 1024 * 1024
_MAX_VMEM = 56 * 1024 * 1024               # stays under v7x's 64 MiB/TC physical VMEM
_RESIDENT_TABLE_BUDGET = 16 * 1024 * 1024  # keep table fully VMEM-resident below this


def _clamp_vmem(needed_bytes):
    return int(min(max(2 * needed_bytes, _MIN_VMEM), _MAX_VMEM))


def _resident_kernel(idx_ref, table_ref, out_ref, *, pack):
    """One grid step: gather `rows` (packed) tokens via one-hot @ (block-diag) table.

    idx_ref:   (rows, pack) int32  -- ids already offset by p*V (sublane-major)
    table_ref: (pack*V, pack*D)    -- block-diagonal packed table (or plain (V, D))
    out_ref:   (rows, pack*D)      -- lane-dense output rows
    """
    idx = idx_ref[...]                                     # (rows, pack)
    rows = idx.shape[0]
    kdim = table_ref.shape[0]                              # pack * V
    col = lax.broadcasted_iota(jnp.int32, (rows, kdim), 1)
    hot = col == idx[:, 0:1]
    for p in range(1, pack):                               # pack is a small static int
        hot = jnp.logical_or(hot, col == idx[:, p:p + 1])
    onehot = hot.astype(table_ref.dtype)
    out_ref[...] = jnp.dot(
        onehot, table_ref[...], preferred_element_type=jnp.float32
    ).astype(out_ref.dtype)


def _vocab_blocked_kernel(idx_ref, table_ref, out_ref, acc_ref):
    """Large-table fallback: stream the table over an 'arbitrary' vocab grid axis."""
    j = pl.program_id(1)

    @pl.when(j == 0)
    def _init():
        acc_ref[...] = jnp.zeros_like(acc_ref)

    idx = idx_ref[...]                                     # (tile, 1)
    tile = idx.shape[0]
    tv = table_ref.shape[0]
    col = j * tv + lax.broadcasted_iota(jnp.int32, (tile, tv), 1)
    onehot = (col == idx).astype(table_ref.dtype)
    acc_ref[...] += jnp.dot(onehot, table_ref[...],
                            preferred_element_type=jnp.float32)

    @pl.when(j == pl.num_programs(1) - 1)
    def _store():
        out_ref[...] = acc_ref[...].astype(out_ref.dtype)


def _resident_call(rows_total, rows_tile, pack, pv, pd, dtype, vmem_bytes):
    return pl.pallas_call(
        functools.partial(_resident_kernel, pack=pack),
        out_shape=jax.ShapeDtypeStruct((rows_total, pd), dtype),
        grid_spec=pltpu.PrefetchScalarGridSpec(
            num_scalar_prefetch=0,
            grid=(rows_total // rows_tile,),
            in_specs=[
                pl.BlockSpec((rows_tile, pack), lambda i: (i, 0)),  # ids on sublanes
                pl.BlockSpec((pv, pd), lambda i: (0, 0)),           # table resident
            ],
            out_specs=pl.BlockSpec((rows_tile, pd), lambda i: (i, 0)),
        ),
        compiler_params=pltpu.CompilerParams(
            dimension_semantics=("parallel",),
            vmem_limit_bytes=vmem_bytes,
        ),
    )


def _vocab_blocked_call(n_pad, tile, v_pad, tv, d, dtype, vmem_bytes):
    return pl.pallas_call(
        _vocab_blocked_kernel,
        out_shape=jax.ShapeDtypeStruct((n_pad, d), dtype),
        grid_spec=pltpu.PrefetchScalarGridSpec(
            num_scalar_prefetch=0,
            grid=(n_pad // tile, v_pad // tv),
            in_specs=[
                pl.BlockSpec((tile, 1), lambda i, j: (i, 0)),
                pl.BlockSpec((tv, d), lambda i, j: (j, 0)),
            ],
            out_specs=pl.BlockSpec((tile, d), lambda i, j: (i, 0)),
            scratch_shapes=[pltpu.VMEM((tile, d), jnp.float32)],
        ),
        compiler_params=pltpu.CompilerParams(
            dimension_semantics=("parallel", "arbitrary"),
            vmem_limit_bytes=vmem_bytes,
        ),
    )


def kmer_embedding(x, table, *, tile_tokens=4096, vocab_block=512,
                   force_vocab_blocked=False):
    """x: int32 [B, S]; table: float [V, D] -> float [B, S, D] (nn.Embedding forward)."""
    B, S = x.shape
    V, D = table.shape
    N = B * S
    dtype = table.dtype
    itemsize = jnp.dtype(dtype).itemsize

    # Lane-dense packing: fold `pack` consecutive tokens into one 128-lane output row.
    pack = 128 // D if (D < 128 and 128 % D == 0) else 1

    base_table_bytes = V * D * itemsize
    packed_table_bytes = base_table_bytes * pack * pack
    use_vocab_blocked = force_vocab_blocked or base_table_bytes > _RESIDENT_TABLE_BUDGET
    if not use_vocab_blocked and packed_table_bytes > _RESIDENT_TABLE_BUDGET:
        pack = 1  # block-diagonal table would blow VMEM; keep the base table resident

    # Token tile: large (amortizes the ~0.35 us per-grid-step cost), multiple of 128
    # and of 8*pack so every block stays (8,128)-legal; clamped for tiny problems.
    gran = max(128, 8 * pack)
    tile = max(gran, min((tile_tokens // gran) * gran, pl.cdiv(N, gran) * gran))
    n_pad = pl.cdiv(N, tile) * tile

    x_flat = x.reshape(N).astype(jnp.int32)
    if n_pad != N:
        x_flat = jnp.pad(x_flat, (0, n_pad - N))  # pad ids -> row 0, sliced off below

    if use_vocab_blocked:
        # Table too large to keep VMEM-resident: stream (tv, D) blocks over an
        # "arbitrary" vocab grid axis and accumulate partial one-hot matmuls.
        tv = max(8, (min(vocab_block, V) // 8) * 8)
        v_pad = pl.cdiv(V, tv) * tv
        table_p = table if v_pad == V else jnp.pad(table, ((0, v_pad - V), (0, 0)))
        needed = (tile * 4 * 2                       # idx tiles
                  + tv * D * itemsize * 2            # table blocks
                  + tile * D * itemsize * 2          # output tiles
                  + tile * D * 4                     # f32 accumulator
                  + tile * tv * 4 * 3)               # one-hot + compare temporaries
        out = _vocab_blocked_call(n_pad, tile, v_pad, tv, D, dtype,
                                  _clamp_vmem(needed))(x_flat[:, None], table_p)
        return out[:N].reshape(B, S, D)

    rows_total = n_pad // pack
    rows_tile = tile // pack
    pv, pd = pack * V, pack * D

    if pack > 1:
        # Block-diagonal packed table: block p holds `table` at rows p*V..(p+1)*V,
        # cols p*D..(p+1)*D.  Ids are pre-offset by p*V, so one MXU matmul yields
        # the lane-dense (rows, 128) output directly (no in-kernel relayout).
        eye = jnp.eye(pack, dtype=dtype)
        table_in = jnp.einsum("pq,vd->pvqd", eye, table).reshape(pv, pd)
        offsets = (jnp.arange(pack, dtype=jnp.int32) * V)[None, :]
        idx_in = x_flat.reshape(rows_total, pack) + offsets
    else:
        table_in = table
        idx_in = x_flat[:, None]

    needed = (pv * pd * itemsize * 2                 # table (possibly double-buffered)
              + rows_tile * pack * 4 * 2             # idx tiles
              + rows_tile * pd * itemsize * 2        # output tiles
              + rows_tile * pv * 4 * 3)              # one-hot + compare temporaries
    out = _resident_call(rows_total, rows_tile, pack, pv, pd, dtype,
                         _clamp_vmem(needed))(idx_in, table_in)

    # Unpack lane-dense rows, drop tail padding, restore [B, S, D].
    return out.reshape(n_pad, D)[:N].reshape(B, S, D)


if __name__ == "__main__":
    # Small shapes consistent with the module: vocab_size=64, d_model=32, batch=2, seq=8.
    vocab_size, d_model = 64, 32
    B, S = 2, 8

    key = jax.random.PRNGKey(0)
    k_w, k_x = jax.random.split(key)

    # nn.Embedding default init: weight ~ N(0, 1)
    table = jax.random.normal(k_w, (vocab_size, d_model), dtype=jnp.float32)
    x = jax.random.randint(k_x, (B, S), 0, vocab_size, dtype=jnp.int32)

    ref = jnp.take(table, x, axis=0)  # same semantics as nn.Embedding forward

    # Main (resident block-diagonal packed-table) path.
    out = jax.block_until_ready(kmer_embedding(x, table))
    assert out.shape == (B, S, d_model), out.shape
    assert jnp.allclose(out, ref, atol=1e-6), "resident-table path mismatch"

    # Also exercise the large-table vocab-blocked fallback path once (forced).
    out_vb = jax.block_until_ready(
        kmer_embedding(x, table, force_vocab_blocked=True, vocab_block=32))
    assert jnp.allclose(out_vb, ref, atol=1e-6), "vocab-blocked path mismatch"

    print("KERNEL_OK")
</pallas_src>

<mosaic_0001>
module attributes {stable_mosaic.version = 11 : i64} {
  func.func @_resident_kernel(%arg0: i32, %arg1: memref<32x4xi32, #tpu.memory_space<vmem>>, %arg2: memref<256x128xf32, #tpu.memory_space<vmem>>, %arg3: memref<32x128xf32, #tpu.memory_space<vmem>>) attributes {dimension_semantics = [#tpu.dimension_semantics<parallel>], iteration_bounds = array<i64: 1>, scalar_prefetch = 0 : i64, scratch_operands = 0 : i64, tpu.core_type = #tpu.core_type<tc>, window_params = [{transform_indices = @transform_0, window_bounds = array<i64: 32, 4>}, {pipeline_mode = #tpu.pipeline_mode<synchronous>, transform_indices = @transform_1, window_bounds = array<i64: 256, 128>}, {transform_indices = @transform_2, window_bounds = array<i64: 32, 128>}]} {
    %c0 = arith.constant 0 : index
    %c0_0 = arith.constant 0 : index
    %0 = vector.load %arg1[%c0, %c0_0] : memref<32x4xi32, #tpu.memory_space<vmem>>, vector<32x4xi32>
    %1 = tpu.iota {dimensions = array<i32: 1>} : vector<32x256xi32>
    %2 = vector.extract_strided_slice %0 {offsets = [0, 0], sizes = [32, 1], strides = [1, 1]} : vector<32x4xi32> to vector<32x1xi32>
    %3 = vector.broadcast %2 : vector<32x1xi32> to vector<32x256xi32>
    %4 = arith.cmpi eq, %1, %3 : vector<32x256xi32>
    %5 = vector.extract_strided_slice %0 {offsets = [0, 1], sizes = [32, 1], strides = [1, 1]} : vector<32x4xi32> to vector<32x1xi32>
    %6 = vector.broadcast %5 : vector<32x1xi32> to vector<32x256xi32>
    %7 = arith.cmpi eq, %1, %6 : vector<32x256xi32>
    %8 = arith.ori %4, %7 : vector<32x256xi1>
    %9 = vector.extract_strided_slice %0 {offsets = [0, 2], sizes = [32, 1], strides = [1, 1]} : vector<32x4xi32> to vector<32x1xi32>
    %10 = vector.broadcast %9 : vector<32x1xi32> to vector<32x256xi32>
    %11 = arith.cmpi eq, %1, %10 : vector<32x256xi32>
    %12 = arith.ori %8, %11 : vector<32x256xi1>
    %13 = vector.extract_strided_slice %0 {offsets = [0, 3], sizes = [32, 1], strides = [1, 1]} : vector<32x4xi32> to vector<32x1xi32>
    %14 = vector.broadcast %13 : vector<32x1xi32> to vector<32x256xi32>
    %15 = arith.cmpi eq, %1, %14 : vector<32x256xi32>
    %16 = arith.ori %12, %15 : vector<32x256xi1>
    %17 = arith.extui %16 : vector<32x256xi1> to vector<32x256xi32>
    %18 = arith.sitofp %17 : vector<32x256xi32> to vector<32x256xf32>
    %c0_1 = arith.constant 0 : index
    %c0_2 = arith.constant 0 : index
    %19 = vector.load %arg2[%c0_1, %c0_2] : memref<256x128xf32, #tpu.memory_space<vmem>>, vector<256x128xf32>
    %cst = arith.constant dense<0.000000e+00> : vector<32x128xf32>
    %20 = tpu.matmul %18, %19, %cst {dimension_numbers = #tpu.dot_dimension_numbers<[1], [0], [0], [1], [0, 0, 1, 1], [], []>} : vector<32x256xf32>, vector<256x128xf32>, vector<32x128xf32> -> vector<32x128xf32>
    %c0_3 = arith.constant 0 : index
    %c0_4 = arith.constant 0 : index
    %21 = vector.load %arg3[%c0_3, %c0_4] : memref<32x128xf32, #tpu.memory_space<vmem>>, vector<32x128xf32>
    tpu.vector_store %arg3[%c0_3, %c0_4], %20 {strides = array<i32>} : memref<32x128xf32, #tpu.memory_space<vmem>>, vector<32x128xf32>,
    return
  }
  func.func @transform_0(%arg0: i32) -> (i32, i32) {
    %c0_i32 = arith.constant 0 : i32
    %c0_i32_0 = arith.constant 0 : i32
    return %arg0, %c0_i32 : i32, i32
  }
  func.func @transform_1(%arg0: i32) -> (i32, i32) {
    %c0_i32 = arith.constant 0 : i32
    %c0_i32_0 = arith.constant 0 : i32
    %c0_i32_1 = arith.constant 0 : i32
    return %c0_i32, %c0_i32_0 : i32, i32
  }
  func.func @transform_2(%arg0: i32) -> (i32, i32) {
    %c0_i32 = arith.constant 0 : i32
    %c0_i32_0 = arith.constant 0 : i32
    return %arg0, %c0_i32 : i32, i32
  }
}

</mosaic_0001>

<bundles_post_ra>
// kernel: tpu_custom_call.1
= control target key start
LH: loop header
LB: loop body
LE: loop exit
PB: predicated region body
PF: predicated region fallthrough
CT: control target
= control target key end

     0   :  { %7 = vsyncpa [#allocation3], 0  ;;  %s549_s0 = inlined_call_operand.vmem [shape: s32[32,4], index: 0, kind: input, shape index: {}]   ;;  %s550_s1 = inlined_call_operand.hbm [shape: f32[256,128], index: 1, kind: input, shape index: {}]   ;;  %s551_s2 = inlined_call_operand.hbm [shape: f32[32,128], index: 2, kind: output, shape index: {}]  }
   0x1   :  { %8 = vsyncpa [#allocation4], 0  ;;  %s448_s9 = smov [#allocation2]  }
   0x2   :  { %s16_s10 = sshll.u32 %s448_s9, 4  ;;  %s17_s10 = int_to_ptr.vmem [resolvable:$true] %s16_s10 }
   0x3   :  { %s412_s11 = scalar_lea.vmem %s17_s10, 4096  ;;  %p417_p1 = scmp.lt.s32.totalorder %s17_s10, %s17_s10 }
   0x4   :  { %p413_p0 = scmp.ne.s32.totalorder %s17_s10, %s412_s11  ;;  %p418_p2 = scmp.lt.s32.totalorder %s412_s11, %s412_s11 }
   0x6   :  { %p419_p3 = por %p418_p2, %p417_p1 }
   0x8   :  { %p420_p4 = pnand %p419_p3, %p413_p0 }
   0xa   :  { %423 = shalt.err (!%p420_p4)
}
   0xb   :  { %s449_s12 = smov 128   ;;  %s450_s13 = smov 8  }
   0xc   :  { %22 = dma.hbm_to_vmem [thread:$0]  %s550_s1, 4096, %s17_s10, [#allocation3], %s449_s12, %s449_s12, %s450_s13  }
   0xd   :  { %444 = dma.done.wait [#allocation3], 4096  }
   0xe   :  { %445 = vsyncadd [#allocation3], 4294963200  ;;  %v451_v0 = vmov 1   ;;  %v452_v1 = vmov 0   ;;  %v26_v2 = vld [vmem:[%s549_s0] sm:$0xff]  ;;  %v184_v3 = vld [vmem:[#allocation2 + $0xf8] sm:$0xff]  ;;  %v30_v40 = vlaneseq }
   0xf   :  { %393 = vset.pattern.permute.xlu1 %v451_v0  ;;  %392 = vset.pattern.permute.xlu0 %v452_v1  ;;  %v168_v4 = vld [vmem:[#allocation2 + $0x78] sm:$0xff]  ;;  %v28_v5 = vld [vmem:[%s549_s0 + $0x10] sm:$0xff]  ;;  %v182_v8 = vld [vmem:[#allocation2 + $0xe8] sm:$0xff]  ;;  %v453_v11 = vmov 2   ;;  %v454_v12 = vmov 3   ;;  %v455_v51 = vmov 1.0  }
  0x10   :  { %54 = vperm.xlu1 %393, %v26_v2   ;;  %34 = vperm.xlu0 %392, %v26_v2   ;;  %v183_v6 = vld [vmem:[#allocation2 + $0xf0] sm:$0xff]  ;;  %v166_v9 = vld [vmem:[#allocation2 + $0x68] sm:$0xff]  ;;  %v181_v10 = vld [vmem:[#allocation2 + $0xe0] sm:$0xff]  ;;  %v506_v43 = vand.u32 127, %v30_v40 }
  0x11   :  { %351 = vmatprep.subr.mxu1 %v184_v3  ;;  %307 = vmatprep.subr.mxu0 %v184_v3  ;;  %v167_v7 = vld [vmem:[#allocation2 + $0x70] sm:$0xff]  ;;  %v165_v13 = vld [vmem:[#allocation2 + $0x60] sm:$0xff]  ;;  %v180_v14 = vld [vmem:[#allocation2 + $0xd8] sm:$0xff] }
  0x12   :  { %367 = vmatpush3.msra.mxu1 %v168_v4  ;;  %308 = vmatpush3.msra.mxu0 %v168_v4  ;;  %v490_v15 = vld [vmem:[%s549_s0 + $0x8] sm:$0xff]  ;;  %v164_v16 = vld [vmem:[#allocation2 + $0x58] sm:$0xff]  ;;  %v179_v17 = vld [vmem:[#allocation2 + $0xd0] sm:$0xff]  ;;  %v509_v46 = vadd.s32 128, %v506_v43 }
  0x13   :  { %352 = vmatprep.subr.mxu1 %v183_v6  ;;  %309 = vmatprep.subr.mxu0 %v183_v6  ;;  %v163_v18 = vld [vmem:[#allocation2 + $0x50] sm:$0xff]  ;;  %v178_v19 = vld [vmem:[#allocation2 + $0xc8] sm:$0xff]  ;;  %v177_v21 = vld [vmem:[#allocation2 + $0xc0] sm:$0xff] }
  0x14   :  { %60 = vperm.xlu1 %393, %v28_v5   ;;  %40 = vperm.xlu0 %392, %v28_v5   ;;  %v162_v20 = vld [vmem:[#allocation2 + $0x48] sm:$0xff]  ;;  %v29_v22 = vld [vmem:[%s549_s0 + $0x18] sm:$0xff]  ;;  %v161_v23 = vld [vmem:[#allocation2 + $0x40] sm:$0xff]  ;;  %s456_s0 = smov [#allocation5]  }
  0x15   :  { %368 = vmatpush3.msra.mxu1 %v167_v7  ;;  %310 = vmatpush3.msra.mxu0 %v167_v7  ;;  %v176_v24 = vld [vmem:[#allocation2 + $0xb8] sm:$0xff]  ;;  %v175_v26 = vld [vmem:[#allocation2 + $0xb0] sm:$0xff]  ;;  %v174_v28 = vld [vmem:[#allocation2 + $0xa8] sm:$0xff]  ;;  %s279_s23 = sshll.u32 %s456_s0, 4  ;;  %s280_s23 = int_to_ptr.vmem [resolvable:$true] %s279_s23 }
  0x16   :  { %353 = vmatprep.subr.mxu1 %v182_v8  ;;  %311 = vmatprep.subr.mxu0 %v182_v8  ;;  %v160_v25 = vld [vmem:[#allocation2 + $0x38] sm:$0xff]  ;;  %v159_v27 = vld [vmem:[#allocation2 + $0x30] sm:$0xff]  ;;  %v158_v29 = vld [vmem:[#allocation2 + $0x28] sm:$0xff]  ;;  %s424_s24 = scalar_lea.vmem %s280_s23, 512  ;;  %p429_p6 = scmp.lt.s32.totalorder %s280_s23, %s280_s23 }
  0x17   :  { %369 = vmatpush3.msra.mxu1 %v166_v9  ;;  %312 = vmatpush3.msra.mxu0 %v166_v9  ;;  %v173_v30 = vld [vmem:[#allocation2 + $0xa0] sm:$0xff]  ;;  %v172_v32 = vld [vmem:[#allocation2 + $0x98] sm:$0xff]  ;;  %v171_v34 = vld [vmem:[#allocation2 + $0x90] sm:$0xff]  ;;  %p425_p5 = scmp.ne.s32.totalorder %s280_s23, %s424_s24  ;;  %p430_p7 = scmp.lt.s32.totalorder %s424_s24, %s424_s24 }
  0x18   :  { %394 = vset.pattern.permute.xlu1 %v453_v11  ;;  %396 = vset.pattern.permute.xlu0 %v454_v12  ;;  %v157_v31 = vld [vmem:[#allocation2 + $0x20] sm:$0xff]  ;;  %v156_v33 = vld [vmem:[#allocation2 + $0x18] sm:$0xff]  ;;  %v155_v35 = vld [vmem:[#allocation2 + $0x10] sm:$0xff] }
  0x19   :  { %88 = vperm.xlu1 %394, %v28_v5   ;;  %116 = vperm.xlu0 %396, %v28_v5   ;;  %v170_v36 = vld [vmem:[#allocation2 + $0x88] sm:$0xff]  ;;  %v169_v38 = vld [vmem:[#allocation2 + $0x80] sm:$0xff]  ;;  %p431_p8 = por %p430_p7, %p429_p6 }
  0x1a   :  { %354 = vmatprep.subr.mxu1 %v181_v10  ;;  %313 = vmatprep.subr.mxu0 %v181_v10  ;;  %v154_v37 = vld [vmem:[#allocation2 + $0x8] sm:$0xff]  ;;  %v153_v39 = vld [vmem:[#allocation2] sm:$0xff] }
  0x1b   :  { %370 = vmatpush3.msra.mxu1 %v165_v13  ;;  %314 = vmatpush3.msra.mxu0 %v165_v13  ;;  %p432_p9 = pnand %p431_p8, %p425_p5 }
  0x1c   :  { %355 = vmatprep.subr.mxu1 %v180_v14  ;;  %315 = vmatprep.subr.mxu0 %v180_v14 }
  0x1d   :  { %395 = vset.pattern.permute.xlu1 %v454_v12  ;;  %398 = vset.pattern.permute.xlu0 %v451_v0 }
  0x1e   :  { %110 = vperm.xlu1 %395, %v26_v2   ;;  %57 = vperm.xlu0 %398, %v490_v15  }
  0x1f   :  { %371 = vmatpush3.msra.mxu1 %v164_v16  ;;  %316 = vmatpush3.msra.mxu0 %v164_v16 }
  0x20   :  { %356 = vmatprep.subr.mxu1 %v179_v17  ;;  %317 = vmatprep.subr.mxu0 %v179_v17 }
  0x21   :  { %372 = vmatpush3.msra.mxu1 %v163_v18  ;;  %318 = vmatpush3.msra.mxu0 %v163_v18 }
  0x22   :  { %397 = vset.pattern.permute.xlu1 %v452_v1  ;;  %399 = vset.pattern.permute.xlu0 %v453_v11 }
  0x23   :  { %37 = vperm.xlu1 %397, %v490_v15   ;;  %82 = vperm.xlu0 %399, %v26_v2  }
  0x24   :  { %357 = vmatprep.subr.mxu1 %v178_v19  ;;  %319 = vmatprep.subr.mxu0 %v178_v19 }
  0x25   :  { %373 = vmatpush3.msra.mxu1 %v162_v20  ;;  %320 = vmatpush3.msra.mxu0 %v162_v20 }
  0x26   :  { %358 = vmatprep.subr.mxu1 %v177_v21  ;;  %321 = vmatprep.subr.mxu0 %v177_v21 }
  0x27   :  { %43 = vperm.xlu1 %397, %v29_v22   ;;  %91 = vperm.xlu0 %399, %v29_v22  }
  0x28   :  { %374 = vmatpush3.msra.mxu1 %v161_v23  ;;  %322 = vmatpush3.msra.mxu0 %v161_v23 }
  0x29   :  { %359 = vmatprep.subr.mxu1 %v176_v24  ;;  %323 = vmatprep.subr.mxu0 %v176_v24 }
  0x2a   :  { %375 = vmatpush3.msra.mxu1 %v160_v25  ;;  %324 = vmatpush3.msra.mxu0 %v160_v25 }
  0x2b   :  { %400 = vset.pattern.permute.xlu1 %v451_v0  ;;  %360 = vmatprep.subr.mxu1 %v175_v26 }
  0x2c   :  { %63 = vperm.xlu1 %400, %v29_v22   ;;  %376 = vmatpush3.msra.mxu1 %v159_v27 }
  0x2d   :  { %361 = vmatprep.subr.mxu1 %v174_v28  ;;  %325 = vmatprep.subr.mxu0 %v175_v26 }
  0x2e   :  { %377 = vmatpush3.msra.mxu1 %v158_v29  ;;  %326 = vmatpush3.msra.mxu0 %v159_v27 }
  0x2f   :  { %362 = vmatprep.subr.mxu1 %v173_v30  ;;  %327 = vmatprep.subr.mxu0 %v174_v28 }
  0x30   :  { %401 = vset.pattern.permute.xlu1 %v453_v11  ;;  %378 = vmatpush3.msra.mxu1 %v157_v31 }
  0x31   :  { %85 = vperm.xlu1 %401, %v490_v15   ;;  %363 = vmatprep.subr.mxu1 %v172_v32 }
  0x32   :  { %379 = vmatpush3.msra.mxu1 %v156_v33  ;;  %328 = vmatpush3.msra.mxu0 %v158_v29 }
  0x33   :  { %364 = vmatprep.subr.mxu1 %v171_v34  ;;  %329 = vmatprep.subr.mxu0 %v173_v30 }
  0x34   :  { %380 = vmatpush3.msra.mxu1 %v155_v35  ;;  %330 = vmatpush3.msra.mxu0 %v157_v31 }
  0x35   :  { %402 = vset.pattern.permute.xlu1 %v454_v12  ;;  %365 = vmatprep.subr.mxu1 %v170_v36 }
  0x36   :  { %113 = vperm.xlu1 %402, %v490_v15   ;;  %381 = vmatpush3.msra.mxu1 %v154_v37 }
  0x37   :  { %366 = vmatprep.subr.mxu1 %v169_v38  ;;  %331 = vmatprep.subr.mxu0 %v172_v32 }
  0x38   :  { %382 = vmatpush3.msra.mxu1 %v153_v39  ;;  %332 = vmatpush3.msra.mxu0 %v156_v33 }
  0x39   :  { %333 = vmatprep.subr.mxu0 %v171_v34  ;;  %403 = vset.pattern.permute.xlu0 %v454_v12 }
  0x3a   :  { %119 = vperm.xlu1 %402, %v29_v22   ;;  %334 = vmatpush3.msra.mxu0 %v155_v35 }
  0x3b   :  { %335 = vmatprep.subr.mxu0 %v170_v36 }
  0x3c   :  { %336 = vmatpush3.msra.mxu0 %v154_v37 }
  0x3d   :  { %337 = vmatprep.subr.mxu0 %v169_v38 }
  0x3e   :  { %338 = vmatpush3.msra.mxu0 %v153_v39 }
  0x8b   :  { %v55_v41 = vpop.permute.xlu1 %54  ;;  %v35_v42 = vpop.permute.xlu0 %34 }
  0x8c   :  { %vm65_vm14 = vcmp.eq.s32.totalorder %v506_v43, %v55_v41  ;;  %vm45_vm15 = vcmp.eq.s32.totalorder %v506_v43, %v35_v42 }
  0x8f   :  { %v61_v44 = vpop.permute.xlu1 %60  ;;  %v41_v45 = vpop.permute.xlu0 %40 }
  0x90   :  { %vm69_vm0 = vcmp.eq.s32.totalorder %v506_v43, %v61_v44  ;;  %vm49_vm1 = vcmp.eq.s32.totalorder %v506_v43, %v41_v45  ;;  %vm70_vm2 = vcmp.eq.s32.totalorder %v509_v46, %v61_v44  ;;  %vm50_vm3 = vcmp.eq.s32.totalorder %v509_v46, %v41_v45 }
  0x91   :  { %vm77_vm4 = vmor %vm49_vm1, %vm69_vm0  ;;  %vm66_vm0 = vcmp.eq.s32.totalorder %v509_v46, %v55_v41  ;;  %vm46_vm1 = vcmp.eq.s32.totalorder %v509_v46, %v35_v42 }
  0x92   :  { %vm78_vm8 = vmor %vm50_vm3, %vm70_vm2 }
  0x93   :  { %vm73_vm3 = vmor %vm45_vm15, %vm65_vm14 }
  0x94   :  { %v89_v47 = vpop.permute.xlu1 %88  ;;  %v117_v48 = vpop.permute.xlu0 %116 }
  0x95   :  { %vm97_vm5 = vcmp.eq.s32.totalorder %v506_v43, %v89_v47  ;;  %vm98_vm6 = vcmp.eq.s32.totalorder %v509_v46, %v89_v47  ;;  %vm125_vm7 = vcmp.eq.s32.totalorder %v506_v43, %v117_v48  ;;  %vm126_vm10 = vcmp.eq.s32.totalorder %v509_v46, %v117_v48 }
  0x96   :  { %vm105_vm9 = vmor %vm77_vm4, %vm97_vm5 }
  0x97   :  { %vm133_vm11 = vmor %vm105_vm9, %vm125_vm7 }
  0x98   :  { %vm106_vm12 = vmor %vm78_vm8, %vm98_vm6 }
  0x99   :  { %vm134_vm13 = vmor %vm106_vm12, %vm126_vm10  ;;  %v111_v49 = vpop.permute.xlu1 %110  ;;  %v58_v50 = vpop.permute.xlu0 %57 }
  0x9a   :  { %303 = vmatprep.mubr.msk.f32.mxu1 %vm134_vm13, %v455_v51  ;;  %vm74_vm5 = vmor %vm46_vm1, %vm66_vm0  ;;  %vm122_vm8 = vcmp.eq.s32.totalorder %v509_v46, %v111_v49  ;;  %vm121_vm9 = vcmp.eq.s32.totalorder %v506_v43, %v111_v49  ;;  %vm67_vm12 = vcmp.eq.s32.totalorder %v506_v43, %v58_v50  ;;  %vm68_vm14 = vcmp.eq.s32.totalorder %v509_v46, %v58_v50 }
  0x9b   :  { %304 = vmatmul.mubr.msk.f32.vlgmr.msra.gmra.mxu1 %vm133_vm11, %v455_v51 }
  0x9e   :  { %v38_v52 = vpop.permute.xlu1 %37  ;;  %v83_v53 = vpop.permute.xlu0 %82 }
  0x9f   :  { %vm93_vm2 = vcmp.eq.s32.totalorder %v506_v43, %v83_v53  ;;  %vm94_vm4 = vcmp.eq.s32.totalorder %v509_v46, %v83_v53  ;;  %vm47_vm13 = vcmp.eq.s32.totalorder %v506_v43, %v38_v52  ;;  %vm48_vm15 = vcmp.eq.s32.totalorder %v509_v46, %v38_v52 }
  0xa0   :  { %vm101_vm6 = vmor %vm73_vm3, %vm93_vm2 }
  0xa1   :  { %vm102_vm7 = vmor %vm74_vm5, %vm94_vm4 }
  0xa2   :  { %v44_v54 = vpop.permute.xlu1 %43  ;;  %vm130_vm10 = vmor %vm102_vm7, %vm122_vm8  ;;  %v92_v57 = vpop.permute.xlu0 %91 }
  0xa3   :  { %299 = vmatprep.mubr.msk.f32.mxu0 %vm130_vm10, %v455_v51  ;;  %vm129_vm11 = vmor %vm101_vm6, %vm121_vm9  ;;  %vm51_vm4 = vcmp.eq.s32.totalorder %v506_v43, %v44_v54  ;;  %vm52_vm6 = vcmp.eq.s32.totalorder %v509_v46, %v44_v54 }
  0xa4   :  { %300 = vmatmul.mubr.msk.f32.vlgmr.msra.gmra.mxu0 %vm129_vm11, %v455_v51  ;;  %vm75_vm1 = vmor %vm47_vm13, %vm67_vm12  ;;  %vm99_vm11 = vcmp.eq.s32.totalorder %v506_v43, %v92_v57 }
  0xa5   :  { %vm76_vm3 = vmor %vm48_vm15, %vm68_vm14  ;;  %vm100_vm15 = vcmp.eq.s32.totalorder %v509_v46, %v92_v57 }
  0xa7   :  { %v64_v55 = vpop.permute.xlu1 %63 }
  0xa8   :  { %vm71_vm0 = vcmp.eq.s32.totalorder %v506_v43, %v64_v55  ;;  %vm72_vm2 = vcmp.eq.s32.totalorder %v509_v46, %v64_v55 }
  0xa9   :  { %vm79_vm7 = vmor %vm51_vm4, %vm71_vm0 }
  0xaa   :  { %vm80_vm9 = vmor %vm52_vm6, %vm72_vm2 }
  0xab   :  { %vm107_vm2 = vmor %vm79_vm7, %vm99_vm11 }
  0xac   :  { %v86_v56 = vpop.permute.xlu1 %85  ;;  %vm108_vm6 = vmor %vm80_vm9, %vm100_vm15 }
  0xad   :  { %vm95_vm5 = vcmp.eq.s32.totalorder %v506_v43, %v86_v56  ;;  %vm96_vm8 = vcmp.eq.s32.totalorder %v509_v46, %v86_v56 }
  0xae   :  { %vm103_vm10 = vmor %vm75_vm1, %vm95_vm5 }
  0xaf   :  { %vm104_vm12 = vmor %vm76_vm3, %vm96_vm8 }
  0xb1   :  { %v114_v58 = vpop.permute.xlu1 %113 }
  0xb2   :  { %vm123_vm13 = vcmp.eq.s32.totalorder %v506_v43, %v114_v58  ;;  %vm124_vm14 = vcmp.eq.s32.totalorder %v509_v46, %v114_v58 }
  0xb3   :  { %vm131_vm0 = vmor %vm103_vm10, %vm123_vm13 }
  0xb4   :  { %vm132_vm4 = vmor %vm104_vm12, %vm124_vm14 }
  0xb5   :  { %301 = vmatprep.mubr.msk.f32.mxu0 %vm132_vm4, %v455_v51  ;;  %v120_v59 = vpop.permute.xlu1 %119 }
  0xb6   :  { %vm127_vm1 = vcmp.eq.s32.totalorder %v506_v43, %v120_v59  ;;  %vm128_vm5 = vcmp.eq.s32.totalorder %v509_v46, %v120_v59  ;;  %302 = vmatmul.mubr.msk.f32.gmra.mxu0 %vm131_vm0, %v455_v51 }
  0xb7   :  { %vm135_vm3 = vmor %vm107_vm2, %vm127_vm1 }
  0xb8   :  { %vm136_vm8 = vmor %vm108_vm6, %vm128_vm5 }
  0xb9   :  { %305 = vmatprep.mubr.msk.f32.mxu1 %vm136_vm8, %v455_v51 }
  0xba   :  { %306 = vmatmul.mubr.msk.f32.gmra.mxu1 %vm135_vm3, %v455_v51 }
 0x15b   :  { %v345_v60 = vpop.f32.mrf.mxu1 }
 0x15d   :  { %v346_v61 = vpop.f32.mrf.mxu1 }
 0x15e   :  { %v347_v62 = vadd.f32 %v346_v61, %v345_v60 }
 0x160   :  { %272 = vst [vmem:[#allocation5 + $0x10] sm:$0xff] %v347_v62 }
 0x164   :  { %v339_v63 = vpop.f32.mrf.mxu0 }
 0x166   :  { %v340_v0 = vpop.f32.mrf.mxu0 }
 0x167   :  { %v341_v1 = vadd.f32 %v340_v0, %v339_v63 }
 0x169   :  { %270 = vst [vmem:[#allocation5] sm:$0xff] %v341_v1 }
 0x176   :  { %v342_v2 = vpop.f32.mrf.mxu0 }
 0x178   :  { %v343_v3 = vpop.f32.mrf.mxu0 }
 0x179   :  { %v344_v4 = vadd.f32 %v343_v3, %v342_v2 }
 0x17a   :  { %v348_v5 = vpop.f32.mrf.mxu1 }
 0x17b   :  { %271 = vst [vmem:[#allocation5 + $0x8] sm:$0xff] %v344_v4 }
 0x17c   :  { %v349_v6 = vpop.f32.mrf.mxu1 }
 0x17d   :  { %v350_v7 = vadd.f32 %v349_v6, %v348_v5 }
 0x17f   :  { %273 = vst [vmem:[#allocation5 + $0x18] sm:$0xff] %v350_v7 }
 0x180   :  { %435 = shalt.err (!%p432_p9)
}
 0x181   :  { %285 = dma.vmem_to_hbm [thread:$0]  %s280_s23, 512, %s551_s2, [#allocation4], %s449_s12, %s449_s12, %s450_s13  }
 0x182   :  { %446 = dma.done.wait [#allocation4], 512  }
 0x183   :  { %447 = vsyncadd [#allocation4], 4294966784 }
 0x184   :  { %289 = vsyncpa [#allocation3], 1 }
 0x185   :  { %290 = vsyncpa [#allocation4], 1 }

</bundles_post_ra>
